<compile_context>
chip_gen: v7x
topology: tpu7x:2x2x1
jax: 0.10.0
libtpu: 0.0.40
codegen_flags: <defaults>
</compile_context>

<pallas_src>
import functools

import jax
import jax.numpy as jnp
import numpy as np
from jax.experimental import pallas as pl
from jax.experimental.pallas import tpu as pltpu

H1, C1 = 2, 16          # conv1: GATConv(in, 16, heads=2) -> concat -> 32 features
C2 = 1                  # conv2: GATConv(32, 1, heads=1, concat=False)
NEG_SLOPE = 0.2         # leaky_relu slope (Python float -> jaxpr literal, not a const)
MASK_VALUE = -1e30      # Python float -> jaxpr literal, not a captured constant


# --------------------------------------------------------------------------------------
# Layer 1: softmax + aggregation over one block of target rows (projections hoisted).
# --------------------------------------------------------------------------------------
def gat_layer1_kernel(h_src_ref, a_src_rows_ref, a_dst_ref, adj_ref, b1_ref, x1_ref):
    h_src = h_src_ref[...]                          # (Np, H1*C1)  resident, all sources
    a_src_rows = a_src_rows_ref[...]                # (H1, Np)     resident
    a_dst = a_dst_ref[...]                          # (TQ, H1)     this target tile
    adj_f = adj_ref[...].astype(jnp.float32)        # (TQ, Np)     int8 -> f32 (cheap VPU)
    edge = adj_f > 0.0
    valid = jnp.sum(adj_f, axis=-1, keepdims=True) > 0.0           # (TQ, 1)

    head_outs = []
    for hd in range(H1):                            # static 2-iteration unroll
        e = a_dst[:, hd:hd + 1] + a_src_rows[hd:hd + 1, :]          # (TQ, Np)
        e = jnp.where(e > 0, e, NEG_SLOPE * e)                      # leaky_relu(0.2)
        e = jnp.where(edge, e, MASK_VALUE)                          # single mask
        p = jnp.exp(e - jnp.max(e, axis=-1, keepdims=True))         # masked -> exact 0 (f32)
        a = p * pl.reciprocal(jnp.sum(p, axis=-1, keepdims=True), approx=True)
        head_outs.append(
            jnp.dot(a, h_src[:, hd * C1:(hd + 1) * C1],
                    preferred_element_type=jnp.float32))            # (TQ, C1)

    x1 = jnp.maximum(jnp.concatenate(head_outs, axis=-1) + b1_ref[...], 0.0)
    # Padded / isolated target rows would otherwise contain finite garbage (uniform
    # attention over all sources); zero them so downstream consumers of x1 are clean.
    x1_ref[...] = jnp.where(valid, x1, 0.0)         # single 32-lane store per tile


# --------------------------------------------------------------------------------------
# Layer 2: softmax + weighted sum over sources for one row block; per-row outputs are
# summed outside the kernel (keeps the grid "parallel" instead of a serial accumulator).
# --------------------------------------------------------------------------------------
def gat_layer2_kernel(h2_row_ref, a_src2_row_ref, a_dst2_ref, adj_ref, b2_ref, o2_ref):
    adj_f = adj_ref[...].astype(jnp.float32)                        # (TQ, Np)
    edge = adj_f > 0.0

    e = a_dst2_ref[...] + a_src2_row_ref[...]                       # (TQ, Np)
    e = jnp.where(e > 0, e, NEG_SLOPE * e)
    e = jnp.where(edge, e, MASK_VALUE)
    p = jnp.exp(e - jnp.max(e, axis=-1, keepdims=True))
    # Exact reciprocal: these rows get summed over all N nodes into one scalar, so
    # approx-reciprocal error would accumulate with N.  Operand is only (TQ, 1).
    inv = 1.0 / jnp.sum(p, axis=-1, keepdims=True)                  # (TQ, 1)
    a = p * inv

    o2 = jnp.sum(a * h2_row_ref[...], axis=-1, keepdims=True) + b2_ref[...]   # (TQ, 1)

    # padded target rows (all-zero adjacency) must not contribute to the readout sum
    valid = jnp.sum(adj_f, axis=-1, keepdims=True) > 0.0
    o2_ref[...] = jnp.where(valid, o2, 0.0)


# --------------------------------------------------------------------------------------
# Wrapper
# --------------------------------------------------------------------------------------
def _round_up(n, m):
    return ((n + m - 1) // m) * m


def _default_vmem_limit():
    """Per-generation VMEM budget: v7x has 64 MiB physical/TC, v5e/v6e have 128 MiB."""
    cap = 128 * 1024 * 1024
    try:
        cap = int(pltpu.get_tpu_info().vmem_capacity_bytes)
    except Exception:
        pass
    # leave headroom for compiler scratch; never ask for the entire physical VMEM
    return max(32 * 1024 * 1024, min(cap - 16 * 1024 * 1024, 112 * 1024 * 1024))


def _layer1_live_bytes(tq, n_pad):
    # double-buffered int8 adjacency tile + ~4 live f32 (tq, n_pad) softmax temporaries
    return 2 * tq * n_pad + 4 * 4 * tq * n_pad


@functools.partial(jax.jit, static_argnames=("tq",))
def critic_forward(x, adj, params, *, tq=128):
    n, cin = x.shape
    tq = min(tq, _round_up(n, 8))            # one tile for small graphs, 128-row tiles else
    n_pad = _round_up(n, tq)

    vmem_limit = _default_vmem_limit()
    # Per-generation tile shrink: the same tq that fits v5e/v6e (128 MiB) can blow
    # v7x's 64 MiB; halve tq (staying a multiple of 8 and a divisor of n_pad) until the
    # estimated per-step live set fits the budget.
    while (tq % 16 == 0 and n_pad % (tq // 2) == 0
           and _layer1_live_bytes(tq, n_pad) > int(0.6 * vmem_limit)):
        tq //= 2
    n_tiles = n_pad // tq

    if n_pad != n:
        x = jnp.pad(x, ((0, n_pad - n), (0, 0)))
        adj = jnp.pad(adj, ((0, n_pad - n), (0, n_pad - n)))
    adj_i8 = (adj > 0).astype(jnp.int8)       # dominant HBM stream: 4x narrower than f32

    # --- grid-invariant source-side projections, hoisted out of the grid loops (XLA) ---
    h1 = jnp.dot(x, params["w1"], preferred_element_type=jnp.float32)         # (Np, 32)
    h1_heads = h1.reshape(n_pad, H1, C1)
    a_src1_rows = jnp.einsum("nhc,hc->hn", h1_heads, params["att_src1"])      # (H1, Np)
    a_dst1 = jnp.einsum("nhc,hc->nh", h1_heads, params["att_dst1"])           # (Np, H1)

    cparams = pltpu.CompilerParams(
        dimension_semantics=("parallel",),    # row tiles are independent in BOTH layers
        vmem_limit_bytes=vmem_limit)

    x1 = pl.pallas_call(
        gat_layer1_kernel,
        out_shape=jax.ShapeDtypeStruct((n_pad, H1 * C1), jnp.float32),
        grid=(n_tiles,),
        in_specs=[
            pl.BlockSpec((n_pad, H1 * C1), lambda i: (0, 0)),   # h_src (resident)
            pl.BlockSpec((H1, n_pad), lambda i: (0, 0)),        # a_src rows (resident)
            pl.BlockSpec((tq, H1), lambda i: (i, 0)),           # a_dst tile
            pl.BlockSpec((tq, n_pad), lambda i: (i, 0)),        # adjacency row block (int8)
            pl.BlockSpec((1, H1 * C1), lambda i: (0, 0)),       # b1
        ],
        out_specs=pl.BlockSpec((tq, H1 * C1), lambda i: (i, 0)),
        compiler_params=cparams,
    )(h1, a_src1_rows, a_dst1, adj_i8, params["b1"])

    # --- layer-2 grid-invariant projections (C2 == 1, so these are tiny) ---
    h2 = jnp.dot(x1, params["w2"], preferred_element_type=jnp.float32)        # (Np, 1)
    h2_row = jnp.transpose(h2)                                                # (1, Np)
    a_src2_row = jnp.transpose(h2 * params["att_src2"])                       # (1, Np)
    a_dst2 = h2 * params["att_dst2"]                                          # (Np, 1)

    o2 = pl.pallas_call(
        gat_layer2_kernel,
        out_shape=jax.ShapeDtypeStruct((n_pad, 1), jnp.float32),
        grid=(n_tiles,),
        in_specs=[
            pl.BlockSpec((1, n_pad), lambda i: (0, 0)),         # h2 row (resident)
            pl.BlockSpec((1, n_pad), lambda i: (0, 0)),         # a_src2 row (resident)
            pl.BlockSpec((tq, 1), lambda i: (i, 0)),            # a_dst2 tile
            pl.BlockSpec((tq, n_pad), lambda i: (i, 0)),        # adjacency row block (int8)
            pl.BlockSpec((1, 1), lambda i: (0, 0)),             # b2
        ],
        out_specs=pl.BlockSpec((tq, 1), lambda i: (i, 0)),      # disjoint -> parallel
        compiler_params=cparams,
    )(h2_row, a_src2_row, a_dst2, adj_i8, params["b2"])

    return jnp.sum(o2, axis=0, keepdims=True)                   # node-sum readout, (1, 1)


# --------------------------------------------------------------------------------------
# Pure-jnp dense reference with identical math (for self-check)
# --------------------------------------------------------------------------------------
def reference_forward(x, adj, params):
    h = x @ params["w1"]
    outs = []
    for hd in range(H1):
        hf = h[:, hd * C1:(hd + 1) * C1]
        a_src = (hf * params["att_src1"][hd][None, :]).sum(-1)
        a_dst = (hf * params["att_dst1"][hd][None, :]).sum(-1)
        e = a_dst[:, None] + a_src[None, :]
        e = jnp.where(e > 0, e, NEG_SLOPE * e)
        e = jnp.where(adj > 0, e, -1e30)
        p = jnp.exp(e - e.max(-1, keepdims=True)) * adj
        a = p / p.sum(-1, keepdims=True)
        outs.append(a @ hf)
    x1 = jnp.maximum(jnp.concatenate(outs, -1) + params["b1"], 0.0)
    h2 = x1 @ params["w2"]
    a_src = (h2 * params["att_src2"]).sum(-1)
    a_dst = (h2 * params["att_dst2"]).sum(-1)
    e = a_dst[:, None] + a_src[None, :]
    e = jnp.where(e > 0, e, NEG_SLOPE * e)
    e = jnp.where(adj > 0, e, -1e30)
    p = jnp.exp(e - e.max(-1, keepdims=True)) * adj
    a = p / p.sum(-1, keepdims=True)
    o = a @ h2 + params["b2"]
    return o.sum(0, keepdims=True)


if __name__ == "__main__":
    key = jax.random.PRNGKey(0)
    N, C_IN = 8, 4            # small graph: 8 nodes, 4 input features

    key, kx = jax.random.split(key)
    x = jax.random.normal(kx, (N, C_IN), dtype=jnp.float32)

    # deterministic edge list (src -> dst), plus self-loops (GATConv default)
    edges_src = np.array([0, 1, 2, 3, 4, 5, 6, 7, 0, 2, 4, 6])
    edges_dst = np.array([1, 2, 3, 4, 5, 6, 7, 0, 4, 6, 0, 2])
    adj_np = np.zeros((N, N), dtype=np.float32)
    adj_np[edges_dst, edges_src] = 1.0            # adj[target, source]
    np.fill_diagonal(adj_np, 1.0)                 # add self-loops
    adj = jnp.asarray(adj_np)

    keys = jax.random.split(key, 8)
    params = {
        "w1":       jax.random.normal(keys[0], (C_IN, H1 * C1), jnp.float32) * 0.3,
        "att_src1": jax.random.normal(keys[1], (H1, C1), jnp.float32) * 0.3,
        "att_dst1": jax.random.normal(keys[2], (H1, C1), jnp.float32) * 0.3,
        "b1":       jax.random.normal(keys[3], (1, H1 * C1), jnp.float32) * 0.1,
        "w2":       jax.random.normal(keys[4], (H1 * C1, C2), jnp.float32) * 0.3,
        "att_src2": jax.random.normal(keys[5], (1, C2), jnp.float32) * 0.3,
        "att_dst2": jax.random.normal(keys[6], (1, C2), jnp.float32) * 0.3,
        "b2":       jax.random.normal(keys[7], (1, C2), jnp.float32) * 0.1,
    }

    out = jax.block_until_ready(critic_forward(x, adj, params))
    ref = jax.block_until_ready(reference_forward(x, adj, params))
    np.testing.assert_allclose(np.asarray(out), np.asarray(ref), rtol=2e-3, atol=2e-3)

    print("KERNEL_OK")
</pallas_src>

<mosaic_0001>
module attributes {stable_mosaic.version = 11 : i64} {
  func.func @gat_layer1_kernel(%arg0: i32, %arg1: memref<8x32xf32, #tpu.memory_space<vmem>>, %arg2: memref<2x8xf32, #tpu.memory_space<vmem>>, %arg3: memref<8x2xf32, #tpu.memory_space<vmem>>, %arg4: memref<8x8xi8, #tpu.memory_space<vmem>>, %arg5: memref<1x32xf32, #tpu.memory_space<vmem>>, %arg6: memref<8x32xf32, #tpu.memory_space<vmem>>) attributes {dimension_semantics = [#tpu.dimension_semantics<parallel>], iteration_bounds = array<i64: 1>, scalar_prefetch = 0 : i64, scratch_operands = 0 : i64, tpu.core_type = #tpu.core_type<tc>, window_params = [{pipeline_mode = #tpu.pipeline_mode<synchronous>, transform_indices = @transform_0, window_bounds = array<i64: 8, 32>}, {pipeline_mode = #tpu.pipeline_mode<synchronous>, transform_indices = @transform_1, window_bounds = array<i64: 2, 8>}, {transform_indices = @transform_2, window_bounds = array<i64: 8, 2>}, {transform_indices = @transform_3, window_bounds = array<i64: 8, 8>}, {pipeline_mode = #tpu.pipeline_mode<synchronous>, transform_indices = @transform_4, window_bounds = array<i64: 1, 32>}, {transform_indices = @transform_5, window_bounds = array<i64: 8, 32>}]} {
    %c0 = arith.constant 0 : index
    %c0_0 = arith.constant 0 : index
    %0 = vector.load %arg1[%c0, %c0_0] : memref<8x32xf32, #tpu.memory_space<vmem>>, vector<8x32xf32>
    %c0_1 = arith.constant 0 : index
    %c0_2 = arith.constant 0 : index
    %1 = vector.load %arg2[%c0_1, %c0_2] : memref<2x8xf32, #tpu.memory_space<vmem>>, vector<2x8xf32>
    %c0_3 = arith.constant 0 : index
    %c0_4 = arith.constant 0 : index
    %2 = vector.load %arg3[%c0_3, %c0_4] : memref<8x2xf32, #tpu.memory_space<vmem>>, vector<8x2xf32>
    %c0_5 = arith.constant 0 : index
    %c0_6 = arith.constant 0 : index
    %3 = vector.load %arg4[%c0_5, %c0_6] : memref<8x8xi8, #tpu.memory_space<vmem>>, vector<8x8xi8>
    %4 = arith.sitofp %3 : vector<8x8xi8> to vector<8x8xf32>
    %cst = arith.constant 0.000000e+00 : f32
    %5 = vector.broadcast %cst : f32 to vector<8x8xf32>
    %6 = arith.cmpf ogt, %4, %5 : vector<8x8xf32>
    %cst_7 = arith.constant dense<0.000000e+00> : vector<8xf32>
    %7 = vector.multi_reduction <add>, %4, %cst_7 [1] : vector<8x8xf32> to vector<8xf32>
    %8 = vector.shape_cast %7 : vector<8xf32> to vector<8x1xf32>
    %cst_8 = arith.constant 0.000000e+00 : f32
    %9 = vector.broadcast %cst_8 : f32 to vector<8x1xf32>
    %10 = arith.cmpf ogt, %8, %9 : vector<8x1xf32>
    %11 = vector.extract_strided_slice %2 {offsets = [0, 0], sizes = [8, 1], strides = [1, 1]} : vector<8x2xf32> to vector<8x1xf32>
    %12 = vector.extract_strided_slice %1 {offsets = [0, 0], sizes = [1, 8], strides = [1, 1]} : vector<2x8xf32> to vector<1x8xf32>
    %13 = vector.broadcast %11 : vector<8x1xf32> to vector<8x8xf32>
    %14 = vector.broadcast %12 : vector<1x8xf32> to vector<8x8xf32>
    %15 = arith.addf %13, %14 : vector<8x8xf32>
    %cst_9 = arith.constant 0.000000e+00 : f32
    %16 = vector.broadcast %cst_9 : f32 to vector<8x8xf32>
    %17 = arith.cmpf ogt, %15, %16 : vector<8x8xf32>
    %cst_10 = arith.constant 2.000000e-01 : f32
    %18 = vector.broadcast %cst_10 : f32 to vector<8x8xf32>
    %19 = arith.mulf %18, %15 : vector<8x8xf32>
    %20 = arith.select %17, %15, %19 : vector<8x8xi1>, vector<8x8xf32>
    %cst_11 = arith.constant -1.000000e+30 : f32
    %21 = vector.broadcast %cst_11 : f32 to vector<8x8xf32>
    %22 = arith.select %6, %20, %21 : vector<8x8xi1>, vector<8x8xf32>
    %cst_12 = arith.constant dense<0xFF800000> : vector<8xf32>
    %23 = vector.multi_reduction <maximumf>, %22, %cst_12 [1] : vector<8x8xf32> to vector<8xf32>
    %24 = vector.shape_cast %23 : vector<8xf32> to vector<8x1xf32>
    %25 = vector.broadcast %24 : vector<8x1xf32> to vector<8x8xf32>
    %26 = arith.subf %22, %25 : vector<8x8xf32>
    %27 = math.exp %26 : vector<8x8xf32>
    %cst_13 = arith.constant dense<0.000000e+00> : vector<8xf32>
    %28 = vector.multi_reduction <add>, %27, %cst_13 [1] : vector<8x8xf32> to vector<8xf32>
    %29 = vector.shape_cast %28 : vector<8xf32> to vector<8x1xf32>
    %30 = tpu.reciprocal %29 {approx = true} : vector<8x1xf32> -> vector<8x1xf32>
    %31 = vector.broadcast %30 : vector<8x1xf32> to vector<8x8xf32>
    %32 = arith.mulf %27, %31 : vector<8x8xf32>
    %33 = vector.extract_strided_slice %0 {offsets = [0, 0], sizes = [8, 16], strides = [1, 1]} : vector<8x32xf32> to vector<8x16xf32>
    %cst_14 = arith.constant dense<0.000000e+00> : vector<8x16xf32>
    %34 = tpu.matmul %32, %33, %cst_14 {dimension_numbers = #tpu.dot_dimension_numbers<[1], [0], [0], [1], [0, 0, 1, 1], [], []>} : vector<8x8xf32>, vector<8x16xf32>, vector<8x16xf32> -> vector<8x16xf32>
    %35 = vector.extract_strided_slice %2 {offsets = [0, 1], sizes = [8, 1], strides = [1, 1]} : vector<8x2xf32> to vector<8x1xf32>
    %36 = vector.extract_strided_slice %1 {offsets = [1, 0], sizes = [1, 8], strides = [1, 1]} : vector<2x8xf32> to vector<1x8xf32>
    %37 = vector.broadcast %35 : vector<8x1xf32> to vector<8x8xf32>
    %38 = vector.broadcast %36 : vector<1x8xf32> to vector<8x8xf32>
    %39 = arith.addf %37, %38 : vector<8x8xf32>
    %cst_15 = arith.constant 0.000000e+00 : f32
    %40 = vector.broadcast %cst_15 : f32 to vector<8x8xf32>
    %41 = arith.cmpf ogt, %39, %40 : vector<8x8xf32>
    %cst_16 = arith.constant 2.000000e-01 : f32
    %42 = vector.broadcast %cst_16 : f32 to vector<8x8xf32>
    %43 = arith.mulf %42, %39 : vector<8x8xf32>
    %44 = arith.select %41, %39, %43 : vector<8x8xi1>, vector<8x8xf32>
    %cst_17 = arith.constant -1.000000e+30 : f32
    %45 = vector.broadcast %cst_17 : f32 to vector<8x8xf32>
    %46 = arith.select %6, %44, %45 : vector<8x8xi1>, vector<8x8xf32>
    %cst_18 = arith.constant dense<0xFF800000> : vector<8xf32>
    %47 = vector.multi_reduction <maximumf>, %46, %cst_18 [1] : vector<8x8xf32> to vector<8xf32>
    %48 = vector.shape_cast %47 : vector<8xf32> to vector<8x1xf32>
    %49 = vector.broadcast %48 : vector<8x1xf32> to vector<8x8xf32>
    %50 = arith.subf %46, %49 : vector<8x8xf32>
    %51 = math.exp %50 : vector<8x8xf32>
    %cst_19 = arith.constant dense<0.000000e+00> : vector<8xf32>
    %52 = vector.multi_reduction <add>, %51, %cst_19 [1] : vector<8x8xf32> to vector<8xf32>
    %53 = vector.shape_cast %52 : vector<8xf32> to vector<8x1xf32>
    %54 = tpu.reciprocal %53 {approx = true} : vector<8x1xf32> -> vector<8x1xf32>
    %55 = vector.broadcast %54 : vector<8x1xf32> to vector<8x8xf32>
    %56 = arith.mulf %51, %55 : vector<8x8xf32>
    %57 = vector.extract_strided_slice %0 {offsets = [0, 16], sizes = [8, 16], strides = [1, 1]} : vector<8x32xf32> to vector<8x16xf32>
    %cst_20 = arith.constant dense<0.000000e+00> : vector<8x16xf32>
    %58 = tpu.matmul %56, %57, %cst_20 {dimension_numbers = #tpu.dot_dimension_numbers<[1], [0], [0], [1], [0, 0, 1, 1], [], []>} : vector<8x8xf32>, vector<8x16xf32>, vector<8x16xf32> -> vector<8x16xf32>
    %59 = tpu.concatenate %34, %58 in 1 : vector<8x16xf32>, vector<8x16xf32> -> vector<8x32xf32>
    %c0_21 = arith.constant 0 : index
    %c0_22 = arith.constant 0 : index
    %60 = vector.load %arg5[%c0_21, %c0_22] : memref<1x32xf32, #tpu.memory_space<vmem>>, vector<1x32xf32>
    %61 = vector.broadcast %60 : vector<1x32xf32> to vector<8x32xf32>
    %62 = arith.addf %59, %61 : vector<8x32xf32>
    %cst_23 = arith.constant 0.000000e+00 : f32
    %63 = vector.broadcast %cst_23 : f32 to vector<8x32xf32>
    %64 = arith.maximumf %62, %63 : vector<8x32xf32>
    %cst_24 = arith.constant 0.000000e+00 : f32
    %65 = vector.shape_cast %10 : vector<8x1xi1> to vector<8x1xi1>
    %66 = vector.broadcast %65 : vector<8x1xi1> to vector<8x32xi1>
    %67 = vector.broadcast %cst_24 : f32 to vector<8x32xf32>
    %68 = arith.select %66, %64, %67 : vector<8x32xi1>, vector<8x32xf32>
    %c0_25 = arith.constant 0 : index
    %c0_26 = arith.constant 0 : index
    %69 = vector.load %arg6[%c0_25, %c0_26] : memref<8x32xf32, #tpu.memory_space<vmem>>, vector<8x32xf32>
    tpu.vector_store %arg6[%c0_25, %c0_26], %68 {strides = array<i32>} : memref<8x32xf32, #tpu.memory_space<vmem>>, vector<8x32xf32>,
    return
  }
  func.func @transform_0(%arg0: i32) -> (i32, i32) {
    %c0_i32 = arith.constant 0 : i32
    %c0_i32_0 = arith.constant 0 : i32
    %c0_i32_1 = arith.constant 0 : i32
    return %c0_i32, %c0_i32_0 : i32, i32
  }
  func.func @transform_1(%arg0: i32) -> (i32, i32) {
    %c0_i32 = arith.constant 0 : i32
    %c0_i32_0 = arith.constant 0 : i32
    %c0_i32_1 = arith.constant 0 : i32
    return %c0_i32, %c0_i32_0 : i32, i32
  }
  func.func @transform_2(%arg0: i32) -> (i32, i32) {
    %c0_i32 = arith.constant 0 : i32
    %c0_i32_0 = arith.constant 0 : i32
    return %arg0, %c0_i32 : i32, i32
  }
  func.func @transform_3(%arg0: i32) -> (i32, i32) {
    %c0_i32 = arith.constant 0 : i32
    %c0_i32_0 = arith.constant 0 : i32
    return %arg0, %c0_i32 : i32, i32
  }
  func.func @transform_4(%arg0: i32) -> (i32, i32) {
    %c0_i32 = arith.constant 0 : i32
    %c0_i32_0 = arith.constant 0 : i32
    %c0_i32_1 = arith.constant 0 : i32
    return %c0_i32, %c0_i32_0 : i32, i32
  }
  func.func @transform_5(%arg0: i32) -> (i32, i32) {
    %c0_i32 = arith.constant 0 : i32
    %c0_i32_0 = arith.constant 0 : i32
    return %arg0, %c0_i32 : i32, i32
  }
}

module attributes {stable_mosaic.version = 11 : i64} {
  func.func @gat_layer2_kernel(%arg0: i32, %arg1: memref<1x8xf32, #tpu.memory_space<vmem>>, %arg2: memref<1x8xf32, #tpu.memory_space<vmem>>, %arg3: memref<8x1xf32, #tpu.memory_space<vmem>>, %arg4: memref<8x8xi8, #tpu.memory_space<vmem>>, %arg5: memref<1x1xf32, #tpu.memory_space<vmem>>, %arg6: memref<8x1xf32, #tpu.memory_space<vmem>>) attributes {dimension_semantics = [#tpu.dimension_semantics<parallel>], iteration_bounds = array<i64: 1>, scalar_prefetch = 0 : i64, scratch_operands = 0 : i64, tpu.core_type = #tpu.core_type<tc>, window_params = [{pipeline_mode = #tpu.pipeline_mode<synchronous>, transform_indices = @transform_0, window_bounds = array<i64: 1, 8>}, {pipeline_mode = #tpu.pipeline_mode<synchronous>, transform_indices = @transform_1, window_bounds = array<i64: 1, 8>}, {transform_indices = @transform_2, window_bounds = array<i64: 8, 1>}, {transform_indices = @transform_3, window_bounds = array<i64: 8, 8>}, {pipeline_mode = #tpu.pipeline_mode<synchronous>, transform_indices = @transform_4, window_bounds = array<i64: 1, 1>}, {transform_indices = @transform_5, window_bounds = array<i64: 8, 1>}]} {
    %c0 = arith.constant 0 : index
    %c0_0 = arith.constant 0 : index
    %0 = vector.load %arg4[%c0, %c0_0] : memref<8x8xi8, #tpu.memory_space<vmem>>, vector<8x8xi8>
    %1 = arith.sitofp %0 : vector<8x8xi8> to vector<8x8xf32>
    %cst = arith.constant 0.000000e+00 : f32
    %2 = vector.broadcast %cst : f32 to vector<8x8xf32>
    %3 = arith.cmpf ogt, %1, %2 : vector<8x8xf32>
    %c0_1 = arith.constant 0 : index
    %c0_2 = arith.constant 0 : index
    %4 = vector.load %arg3[%c0_1, %c0_2] : memref<8x1xf32, #tpu.memory_space<vmem>>, vector<8x1xf32>
    %c0_3 = arith.constant 0 : index
    %c0_4 = arith.constant 0 : index
    %5 = vector.load %arg2[%c0_3, %c0_4] : memref<1x8xf32, #tpu.memory_space<vmem>>, vector<1x8xf32>
    %6 = vector.broadcast %4 : vector<8x1xf32> to vector<8x8xf32>
    %7 = vector.broadcast %5 : vector<1x8xf32> to vector<8x8xf32>
    %8 = arith.addf %6, %7 : vector<8x8xf32>
    %cst_5 = arith.constant 0.000000e+00 : f32
    %9 = vector.broadcast %cst_5 : f32 to vector<8x8xf32>
    %10 = arith.cmpf ogt, %8, %9 : vector<8x8xf32>
    %cst_6 = arith.constant 2.000000e-01 : f32
    %11 = vector.broadcast %cst_6 : f32 to vector<8x8xf32>
    %12 = arith.mulf %11, %8 : vector<8x8xf32>
    %13 = arith.select %10, %8, %12 : vector<8x8xi1>, vector<8x8xf32>
    %cst_7 = arith.constant -1.000000e+30 : f32
    %14 = vector.broadcast %cst_7 : f32 to vector<8x8xf32>
    %15 = arith.select %3, %13, %14 : vector<8x8xi1>, vector<8x8xf32>
    %cst_8 = arith.constant dense<0xFF800000> : vector<8xf32>
    %16 = vector.multi_reduction <maximumf>, %15, %cst_8 [1] : vector<8x8xf32> to vector<8xf32>
    %17 = vector.shape_cast %16 : vector<8xf32> to vector<8x1xf32>
    %18 = vector.broadcast %17 : vector<8x1xf32> to vector<8x8xf32>
    %19 = arith.subf %15, %18 : vector<8x8xf32>
    %20 = math.exp %19 : vector<8x8xf32>
    %cst_9 = arith.constant dense<0.000000e+00> : vector<8xf32>
    %21 = vector.multi_reduction <add>, %20, %cst_9 [1] : vector<8x8xf32> to vector<8xf32>
    %22 = vector.shape_cast %21 : vector<8xf32> to vector<8x1xf32>
    %cst_10 = arith.constant 1.000000e+00 : f32
    %23 = vector.broadcast %cst_10 : f32 to vector<8x1xf32>
    %24 = arith.divf %23, %22 : vector<8x1xf32>
    %25 = vector.broadcast %24 : vector<8x1xf32> to vector<8x8xf32>
    %26 = arith.mulf %20, %25 : vector<8x8xf32>
    %c0_11 = arith.constant 0 : index
    %c0_12 = arith.constant 0 : index
    %27 = vector.load %arg1[%c0_11, %c0_12] : memref<1x8xf32, #tpu.memory_space<vmem>>, vector<1x8xf32>
    %28 = vector.broadcast %27 : vector<1x8xf32> to vector<8x8xf32>
    %29 = arith.mulf %26, %28 : vector<8x8xf32>
    %cst_13 = arith.constant dense<0.000000e+00> : vector<8xf32>
    %30 = vector.multi_reduction <add>, %29, %cst_13 [1] : vector<8x8xf32> to vector<8xf32>
    %31 = vector.shape_cast %30 : vector<8xf32> to vector<8x1xf32>
    %c0_14 = arith.constant 0 : index
    %c0_15 = arith.constant 0 : index
    %32 = vector.load %arg5[%c0_14, %c0_15] : memref<1x1xf32, #tpu.memory_space<vmem>>, vector<1x1xf32>
    %33 = vector.broadcast %32 : vector<1x1xf32> to vector<8x1xf32>
    %34 = arith.addf %31, %33 : vector<8x1xf32>
    %cst_16 = arith.constant dense<0.000000e+00> : vector<8xf32>
    %35 = vector.multi_reduction <add>, %1, %cst_16 [1] : vector<8x8xf32> to vector<8xf32>
    %36 = vector.shape_cast %35 : vector<8xf32> to vector<8x1xf32>
    %cst_17 = arith.constant 0.000000e+00 : f32
    %37 = vector.broadcast %cst_17 : f32 to vector<8x1xf32>
    %38 = arith.cmpf ogt, %36, %37 : vector<8x1xf32>
    %cst_18 = arith.constant 0.000000e+00 : f32
    %39 = vector.broadcast %cst_18 : f32 to vector<8x1xf32>
    %40 = arith.select %38, %34, %39 : vector<8x1xi1>, vector<8x1xf32>
    %c0_19 = arith.constant 0 : index
    %c0_20 = arith.constant 0 : index
    %41 = vector.load %arg6[%c0_19, %c0_20] : memref<8x1xf32, #tpu.memory_space<vmem>>, vector<8x1xf32>
    tpu.vector_store %arg6[%c0_19, %c0_20], %40 {strides = array<i32>} : memref<8x1xf32, #tpu.memory_space<vmem>>, vector<8x1xf32>,
    return
  }
  func.func @transform_0(%arg0: i32) -> (i32, i32) {
    %c0_i32 = arith.constant 0 : i32
    %c0_i32_0 = arith.constant 0 : i32
    %c0_i32_1 = arith.constant 0 : i32
    return %c0_i32, %c0_i32_0 : i32, i32
  }
  func.func @transform_1(%arg0: i32) -> (i32, i32) {
    %c0_i32 = arith.constant 0 : i32
    %c0_i32_0 = arith.constant 0 : i32
    %c0_i32_1 = arith.constant 0 : i32
    return %c0_i32, %c0_i32_0 : i32, i32
  }
  func.func @transform_2(%arg0: i32) -> (i32, i32) {
    %c0_i32 = arith.constant 0 : i32
    %c0_i32_0 = arith.constant 0 : i32
    return %arg0, %c0_i32 : i32, i32
  }
  func.func @transform_3(%arg0: i32) -> (i32, i32) {
    %c0_i32 = arith.constant 0 : i32
    %c0_i32_0 = arith.constant 0 : i32
    return %arg0, %c0_i32 : i32, i32
  }
  func.func @transform_4(%arg0: i32) -> (i32, i32) {
    %c0_i32 = arith.constant 0 : i32
    %c0_i32_0 = arith.constant 0 : i32
    %c0_i32_1 = arith.constant 0 : i32
    return %c0_i32, %c0_i32_0 : i32, i32
  }
  func.func @transform_5(%arg0: i32) -> (i32, i32) {
    %c0_i32 = arith.constant 0 : i32
    %c0_i32_0 = arith.constant 0 : i32
    return %arg0, %c0_i32 : i32, i32
  }
}

</mosaic_0001>

<bundles_post_ra>
// kernel: critic_forward.3
= control target key start
LH: loop header
LB: loop body
LE: loop exit
PB: predicated region body
PF: predicated region fallthrough
CT: control target
= control target key end

     0   :  { %s383_s0 = inlined_call_operand.hbm [shape: f32[1,8], index: 0, kind: input, shape index: {}]   ;;  %s384_s1 = inlined_call_operand.hbm [shape: f32[1,8], index: 1, kind: input, shape index: {}]   ;;  %s385_s2 = inlined_call_operand.hbm [shape: f32[8,1], index: 2, kind: input, shape index: {}]   ;;  %s386_s3 = inlined_call_operand.hbm [shape: s8[8,8], index: 3, kind: input, shape index: {}]   ;;  %s387_s4 = inlined_call_operand.<no memory space> [shape: f32[1,1], index: 4, kind: input, shape index: {}]   ;;  %s388_s5 = inlined_call_operand.hbm [shape: f32[8,1], index: 5, kind: output, shape index: {}]  }
   0x1   :  { %v10_v0 = vstv %s387_s4 }
   0x2   :  { %11 = vst [vmem:[#allocation2] sm:$0x1] %v10_v0 }
   0x3   :  { %12 = vsyncpa [#allocation4], 0 }
   0x4   :  { %13 = vsyncpa [#allocation7], 0 }
   0x5   :  { %14 = vsyncpa [#allocation10], 0 }
   0x6   :  { %15 = vsyncpa [#allocation5], 0  ;;  %s280_s20 = smov [#allocation6]   ;;  %s281_s22 = smov [#allocation3]  }
   0x7   :  { %s32_s21 = sshll.u32 %s280_s20, 4  ;;  %s22_s23 = sshll.u32 %s281_s22, 4  ;;  %s33_s21 = int_to_ptr.vmem [resolvable:$true] %s32_s21  ;;  %s23_s23 = int_to_ptr.vmem [resolvable:$true] %s22_s23 }
   0x8   :  { %s162_s26 = scalar_lea.hbm %s384_s1, 16 }
   0x9   :  { %p163_p0 = scmp.ne.s32.totalorder %s384_s1, %s162_s26  ;;  %p166_p1 = scmp.lt.u32.totalorder %s162_s26, %s384_s1 }
   0xb   :  { %p168_p2 = pnand %p166_p1, %p163_p0 }
   0xd   :  { %171 = shalt.err (!%p168_p2)
}
   0xe   :  { %s172_s30 = scalar_lea.vmem %s33_s21, 16  ;;  %s176_s6 = scalar_lea.vmem %s33_s21, 32 }
   0xf   :  { %p173_p3 = scmp.ne.s32.totalorder %s33_s21, %s172_s30  ;;  %p177_p4 = scmp.lt.s32.totalorder %s33_s21, %s33_s21 }
  0x10   :  { %p178_p5 = scmp.lt.s32.totalorder %s176_s6, %s172_s30 }
  0x12   :  { %p179_p6 = por %p178_p5, %p177_p4 }
  0x14   :  { %p180_p7 = pnand %p179_p6, %p173_p3 }
  0x16   :  { %183 = shalt.err (!%p180_p7)
}
  0x17   :  { %35 = dma.hbm_to_vmem [thread:$0]  %s384_s1, 16, %s33_s21, [#allocation7]  }
  0x18   :  { %s184_s11 = scalar_lea.hbm %s383_s0, 16 }
  0x19   :  { %p185_p8 = scmp.ne.s32.totalorder %s383_s0, %s184_s11  ;;  %p188_p9 = scmp.lt.u32.totalorder %s184_s11, %s383_s0 }
  0x1b   :  { %p190_p10 = pnand %p188_p9, %p185_p8 }
  0x1d   :  { %193 = shalt.err (!%p190_p10)
}
  0x1e   :  { %s194_s16 = scalar_lea.vmem %s23_s23, 16  ;;  %s198_s17 = scalar_lea.vmem %s23_s23, 32 }
  0x1f   :  { %p195_p11 = scmp.ne.s32.totalorder %s23_s23, %s194_s16  ;;  %p199_p12 = scmp.lt.s32.totalorder %s23_s23, %s23_s23 }
  0x20   :  { %p200_p13 = scmp.lt.s32.totalorder %s198_s17, %s194_s16 }
  0x22   :  { %p201_p0 = por %p200_p13, %p199_p12 }
  0x24   :  { %p202_p1 = pnand %p201_p0, %p195_p11 }
  0x26   :  { %205 = shalt.err (!%p202_p1)
}
  0x27   :  { %25 = dma.hbm_to_vmem [thread:$0]  %s383_s0, 16, %s23_s23, [#allocation4]  }
  0x28   :  { %s282_s19 = smov [#allocation8]   ;;  %s283_s21 = smov [#allocation9]  }
  0x29   :  { %s42_s20 = sshll.u32 %s282_s19, 4  ;;  %s52_s22 = sshll.u32 %s283_s21, 4  ;;  %s43_s20 = int_to_ptr.vmem [resolvable:$true] %s42_s20  ;;  %s53_s22 = int_to_ptr.vmem [resolvable:$true] %s52_s22 }
  0x2a   :  { %s206_s26 = scalar_lea.hbm %s385_s2, 128 }
  0x2b   :  { %p207_p2 = scmp.ne.s32.totalorder %s385_s2, %s206_s26  ;;  %p210_p3 = scmp.lt.u32.totalorder %s206_s26, %s385_s2 }
  0x2d   :  { %p212_p4 = pnand %p210_p3, %p207_p2 }
  0x2f   :  { %215 = shalt.err (!%p212_p4)
}
  0x30   :  { %s216_s0 = scalar_lea.vmem %s43_s20, 128  ;;  %p221_p6 = scmp.lt.s32.totalorder %s43_s20, %s43_s20 }
  0x31   :  { %p217_p5 = scmp.ne.s32.totalorder %s43_s20, %s216_s0  ;;  %p222_p7 = scmp.lt.s32.totalorder %s216_s0, %s216_s0 }
  0x33   :  { %p223_p8 = por %p222_p7, %p221_p6 }
  0x35   :  { %p224_p9 = pnand %p223_p8, %p217_p5 }
  0x37   :  { %227 = shalt.err (!%p224_p9)
}
  0x38   :  { %45 = dma.hbm_to_vmem [thread:$0]  %s385_s2, 128, %s43_s20, [#allocation7]  }
  0x39   :  { %s228_s8 = scalar_lea.hbm %s386_s3, 32 }
  0x3a   :  { %p229_p10 = scmp.ne.s32.totalorder %s386_s3, %s228_s8  ;;  %p232_p11 = scmp.lt.u32.totalorder %s228_s8, %s386_s3 }
  0x3c   :  { %p234_p12 = pnand %p232_p11, %p229_p10 }
  0x3e   :  { %237 = shalt.err (!%p234_p12)
}
  0x3f   :  { %s238_s13 = scalar_lea.vmem %s53_s22, 32  ;;  %p243_p0 = scmp.lt.s32.totalorder %s53_s22, %s53_s22 }
  0x40   :  { %p239_p13 = scmp.ne.s32.totalorder %s53_s22, %s238_s13  ;;  %p244_p1 = scmp.lt.s32.totalorder %s238_s13, %s238_s13 }
  0x42   :  { %p245_p2 = por %p244_p1, %p243_p0 }
  0x44   :  { %p246_p3 = pnand %p245_p2, %p239_p13 }
  0x46   :  { %249 = shalt.err (!%p246_p3)
}
  0x47   :  { %55 = dma.hbm_to_vmem [thread:$0]  %s386_s3, 32, %s53_s22, [#allocation10]  }
  0x48   :  { %272 = dma.done.wait [#allocation4], 16  }
  0x49   :  { %273 = vsyncadd [#allocation4], 4294967280 }
  0x4a   :  { %274 = dma.done.wait [#allocation7], 144  }
  0x4b   :  { %275 = vsyncadd [#allocation7], 4294967152 }
  0x4c   :  { %276 = dma.done.wait [#allocation10], 32  }
  0x4d   :  { %277 = vsyncadd [#allocation10], 4294967264  ;;  %v284_v1 = vmov 0   ;;  %v74_v2 = vld [vmem:[#allocation8] sm:$0xff]  ;;  %v70_v3 = vld [vmem:[#allocation9] sm:$0x3] }
  0x4e   :  { %157 = vset.pattern.permute.xlu0 %v284_v1  ;;  %v71_v4 = vunpack.c.0.s8 %v70_v3  ;;  %v148_v5 = vld [vmem:[#allocation6] ss:$0 sm:$0xff]  ;;  %vm92_vm2 = vcmask 64512   ;;  %v149_v20 = vld [vmem:[#allocation3] ss:$0 sm:$0xff]  ;;  %s285_s3 = smov [#allocation11]  }
  0x4f   :  { %78 = vperm.xlu0 %157, %v74_v2   ;;  %v150_v26 = vld [vmem:[#allocation2] ss:$0 sm:$0xff]  ;;  %s137_s15 = sshll.u32 %s285_s3, 4  ;;  %vm129_vm3 = vcmask 7168   ;;  %s138_s15 = int_to_ptr.vmem [resolvable:$true] %s137_s15 }
  0x50   :  { %v72_v6 = vcvt.s32.f32 %v71_v4  ;;  %s250_s16 = scalar_lea.vmem %s138_s15, 128  ;;  %p255_p5 = scmp.lt.s32.totalorder %s138_s15, %s138_s15 }
  0x51   :  { %p251_p4 = scmp.ne.s32.totalorder %s138_s15, %s250_s16  ;;  %p256_p6 = scmp.lt.s32.totalorder %s250_s16, %s250_s16 }
  0x52   :  { %vm73_vm0 = vcmp.gt.f32.partialorder %v72_v6, 0.0  ;;  %v124_v24 = vsel %vm92_vm2, %v72_v6, 0.0 }
  0x53   :  { %p257_p7 = por %p256_p6, %p255_p5 }
  0x55   :  { %p258_p8 = pnand %p257_p7, %p251_p4 }
  0xce   :  { %v79_v7 = vpop.permute.xlu0 %78 }
  0xcf   :  { %v87_v8 = vadd.f32 %v148_v5, %v79_v7 }
  0xd1   :  { %v89_v9 = vmul.f32 0.2, %v87_v8  ;;  %vm88_vm1 = vcmp.gt.f32.partialorder %v87_v8, 0.0 }
  0xd3   :  { %v90_v10 = vsel %vm88_vm1, %v87_v8, %v89_v9 }
  0xd4   :  { %v91_v11 = vsel %vm73_vm0, %v90_v10, -1e+30 }
  0xd5   :  { %v93_v12 = vsel %vm92_vm2, %v91_v11, -inf }
  0xd6   :  { %94 = vmax.xlane.f32.xlu0 %v93_v12 }
 0x163   :  { %v95_v13 = vpop.xlane.xlu0 %94 }
 0x164   :  { %v96_v14 = vsub.f32 %v91_v11, %v95_v13 }
 0x166   :  { %v97_v15 = vmul.f32 1.442695, %v96_v14 }
 0x168   :  { %158 = vpow2.f32 %v97_v15 }
 0x172   :  { %v159_v16 = vpop.eup %158 }
 0x173   :  { %v99_v17 = vsel %vm92_vm2, %v159_v16, 0.0 }
 0x174   :  { %100 = vadd.xlane.f32.xlu1 %v99_v17 }
 0x201   :  { %v101_v18 = vpop.xlane.xlu1 %100 }
 0x202   :  { %160 = vrcp.f32 %v101_v18 }
 0x20c   :  { %v161_v19 = vpop.eup %160 }
 0x20d   :  { %v104_v21 = vmul.f32 %v161_v19, %v159_v16 }
 0x20f   :  { %v112_v22 = vmul.f32 %v149_v20, %v104_v21 }
 0x211   :  { %v113_v23 = vsel %vm92_vm2, %v112_v22, 0.0 }
 0x212   :  { %114 = vadd.xlane.f32.xlu1 %v113_v23 }
 0x216   :  { %125 = vadd.xlane.f32.xlu1 %v124_v24 }
 0x29f   :  { %v115_v25 = vpop.xlane.xlu1 %114 }
 0x2a0   :  { %v123_v27 = vadd.f32 %v150_v26, %v115_v25 }
 0x2a3   :  { %v126_v28 = vpop.xlane.xlu1 %125 }
 0x2a4   :  { %vm127_vm4 = vcmp.gt.f32.partialorder %v126_v28, 0.0 }
 0x2a5   :  { %v128_v29 = vsel %vm127_vm4, %v123_v27, 0.0 }
 0x2a6   :  { %130 = vst.msk [vmem:[#allocation11] sm:$0xff] %vm129_vm3, %v128_v29 }
 0x2a7   :  { %261 = shalt.err (!%p258_p8)
}
 0x2a8   :  { %s262_s18 = scalar_lea.hbm %s388_s5, 128 }
 0x2a9   :  { %p263_p9 = scmp.ne.s32.totalorder %s388_s5, %s262_s18  ;;  %p266_p10 = scmp.lt.u32.totalorder %s262_s18, %s388_s5 }
 0x2ab   :  { %p268_p11 = pnand %p266_p10, %p263_p9 }
 0x2ad   :  { %271 = shalt.err (!%p268_p11)
}
 0x2ae   :  { %140 = dma.vmem_to_hbm [thread:$0]  %s138_s15, 128, %s388_s5, [#allocation5]  }
 0x2af   :  { %278 = dma.done.wait [#allocation5], 128  }
 0x2b0   :  { %279 = vsyncadd [#allocation5], 4294967168 }
 0x2b1   :  { %144 = vsyncpa [#allocation4], 1 }
 0x2b2   :  { %145 = vsyncpa [#allocation7], 1 }
 0x2b3   :  { %146 = vsyncpa [#allocation10], 1 }
 0x2b4   :  { %147 = vsyncpa [#allocation5], 1 }

// kernel: critic_forward.2
= control target key start
LH: loop header
LB: loop body
LE: loop exit
PB: predicated region body
PF: predicated region fallthrough
CT: control target
= control target key end

     0   :  { %10 = vsyncpa [#allocation3], 0  ;;  %s628_s0 = inlined_call_operand.hbm [shape: f32[8,32], index: 0, kind: input, shape index: {}]   ;;  %s629_s1 = inlined_call_operand.hbm [shape: f32[2,8], index: 1, kind: input, shape index: {}]   ;;  %s630_s2 = inlined_call_operand.hbm [shape: f32[8,2], index: 2, kind: input, shape index: {}]   ;;  %s631_s3 = inlined_call_operand.hbm [shape: s8[8,8], index: 3, kind: input, shape index: {}]   ;;  %s632_s4 = inlined_call_operand.hbm [shape: f32[1,32], index: 4, kind: input, shape index: {}]   ;;  %s633_s5 = inlined_call_operand.hbm [shape: f32[8,32], index: 5, kind: output, shape index: {}]  }
   0x1   :  { %11 = vsyncpa [#allocation6], 0 }
   0x2   :  { %12 = vsyncpa [#allocation9], 0 }
   0x3   :  { %13 = vsyncpa [#allocation4], 0  ;;  %s507_s18 = smov [#allocation5]   ;;  %s508_s20 = smov [#allocation8]  }
   0x4   :  { %s30_s19 = sshll.u32 %s507_s18, 4  ;;  %s50_s21 = sshll.u32 %s508_s20, 4  ;;  %s31_s19 = int_to_ptr.vmem [resolvable:$true] %s30_s19  ;;  %s51_s21 = int_to_ptr.vmem [resolvable:$true] %s50_s21 }
   0x5   :  { %s367_s24 = scalar_lea.hbm %s629_s1, 32 }
   0x6   :  { %p368_p0 = scmp.ne.s32.totalorder %s629_s1, %s367_s24  ;;  %p371_p1 = scmp.lt.u32.totalorder %s367_s24, %s629_s1 }
   0x8   :  { %p373_p2 = pnand %p371_p1, %p368_p0 }
   0xa   :  { %376 = shalt.err (!%p373_p2)
}
   0xb   :  { %s377_s29 = scalar_lea.vmem %s31_s19, 32  ;;  %p382_p4 = scmp.lt.s32.totalorder %s31_s19, %s31_s19 }
   0xc   :  { %p378_p3 = scmp.ne.s32.totalorder %s31_s19, %s377_s29  ;;  %p383_p5 = scmp.lt.s32.totalorder %s377_s29, %s377_s29 }
   0xe   :  { %p384_p6 = por %p383_p5, %p382_p4 }
  0x10   :  { %p385_p7 = pnand %p384_p6, %p378_p3 }
  0x12   :  { %388 = shalt.err (!%p385_p7)
}
  0x13   :  { %33 = dma.hbm_to_vmem [thread:$0]  %s629_s1, 32, %s31_s19, [#allocation6]  }
  0x14   :  { %s389_s9 = scalar_lea.hbm %s631_s3, 32 }
  0x15   :  { %p390_p8 = scmp.ne.s32.totalorder %s631_s3, %s389_s9  ;;  %p393_p9 = scmp.lt.u32.totalorder %s389_s9, %s631_s3 }
  0x17   :  { %p395_p10 = pnand %p393_p9, %p390_p8 }
  0x19   :  { %398 = shalt.err (!%p395_p10)
}
  0x1a   :  { %s399_s14 = scalar_lea.vmem %s51_s21, 32  ;;  %p404_p12 = scmp.lt.s32.totalorder %s51_s21, %s51_s21 }
  0x1b   :  { %p400_p11 = scmp.ne.s32.totalorder %s51_s21, %s399_s14  ;;  %p405_p13 = scmp.lt.s32.totalorder %s399_s14, %s399_s14 }
  0x1d   :  { %p406_p0 = por %p405_p13, %p404_p12 }
  0x1f   :  { %p407_p1 = pnand %p406_p0, %p400_p11 }
  0x21   :  { %410 = shalt.err (!%p407_p1)
}
  0x22   :  { %53 = dma.hbm_to_vmem [thread:$0]  %s631_s3, 32, %s51_s21, [#allocation9]  }
  0x23   :  { %s509_s16 = smov [#allocation2]   ;;  %s510_s18 = smov [#allocation7]  }
  0x24   :  { %s20_s17 = sshll.u32 %s509_s16, 4  ;;  %s40_s19 = sshll.u32 %s510_s18, 4  ;;  %s21_s17 = int_to_ptr.vmem [resolvable:$true] %s20_s17  ;;  %s41_s19 = int_to_ptr.vmem [resolvable:$true] %s40_s19 }
  0x25   :  { %s411_s23 = scalar_lea.hbm %s628_s0, 128 }
  0x26   :  { %p412_p2 = scmp.ne.s32.totalorder %s628_s0, %s411_s23  ;;  %p415_p3 = scmp.lt.u32.totalorder %s411_s23, %s628_s0 }
  0x28   :  { %p417_p4 = pnand %p415_p3, %p412_p2 }
  0x2a   :  { %420 = shalt.err (!%p417_p4)
}
  0x2b   :  { %s421_s3 = scalar_lea.vmem %s21_s17, 128  ;;  %p426_p6 = scmp.lt.s32.totalorder %s21_s17, %s21_s17 }
  0x2c   :  { %p422_p5 = scmp.ne.s32.totalorder %s21_s17, %s421_s3  ;;  %p427_p7 = scmp.lt.s32.totalorder %s421_s3, %s421_s3 }
  0x2e   :  { %p428_p8 = por %p427_p7, %p426_p6 }
  0x30   :  { %p429_p9 = pnand %p428_p8, %p422_p5 }
  0x32   :  { %432 = shalt.err (!%p429_p9)
}
  0x33   :  { %23 = dma.hbm_to_vmem [thread:$0]  %s628_s0, 128, %s21_s17, [#allocation3]  }
  0x34   :  { %s433_s6 = scalar_lea.hbm %s630_s2, 128 }
  0x35   :  { %p434_p10 = scmp.ne.s32.totalorder %s630_s2, %s433_s6  ;;  %p437_p11 = scmp.lt.u32.totalorder %s433_s6, %s630_s2 }
  0x37   :  { %p439_p12 = pnand %p437_p11, %p434_p10 }
  0x39   :  { %442 = shalt.err (!%p439_p12)
}
  0x3a   :  { %s443_s11 = scalar_lea.vmem %s41_s19, 128  ;;  %p448_p0 = scmp.lt.s32.totalorder %s41_s19, %s41_s19 }
  0x3b   :  { %p444_p13 = scmp.ne.s32.totalorder %s41_s19, %s443_s11  ;;  %p449_p1 = scmp.lt.s32.totalorder %s443_s11, %s443_s11 }
  0x3d   :  { %p450_p2 = por %p449_p1, %p448_p0 }
  0x3f   :  { %p451_p3 = pnand %p450_p2, %p444_p13 }
  0x41   :  { %454 = shalt.err (!%p451_p3)
}
  0x42   :  { %43 = dma.hbm_to_vmem [thread:$0]  %s630_s2, 128, %s41_s19, [#allocation6]  }
  0x43   :  { %s511_s13 = smov [#allocation10]   ;;  %s455_s16 = scalar_lea.hbm %s632_s4, 16 }
  0x44   :  { %s60_s14 = sshll.u32 %s511_s13, 4  ;;  %p456_p4 = scmp.ne.s32.totalorder %s632_s4, %s455_s16  ;;  %s61_s14 = int_to_ptr.vmem [resolvable:$true] %s60_s14 }
  0x45   :  { %p459_p5 = scmp.lt.u32.totalorder %s455_s16, %s632_s4 }
  0x47   :  { %p461_p6 = pnand %p459_p5, %p456_p4 }
  0x49   :  { %464 = shalt.err (!%p461_p6)
}
  0x4a   :  { %s465_s23 = scalar_lea.vmem %s61_s14, 16  ;;  %s469_s2 = scalar_lea.vmem %s61_s14, 32 }
  0x4b   :  { %p466_p7 = scmp.ne.s32.totalorder %s61_s14, %s465_s23  ;;  %p470_p8 = scmp.lt.s32.totalorder %s61_s14, %s61_s14 }
  0x4c   :  { %p471_p9 = scmp.lt.s32.totalorder %s469_s2, %s465_s23 }
  0x4e   :  { %p472_p10 = por %p471_p9, %p470_p8 }
  0x50   :  { %p473_p11 = pnand %p472_p10, %p466_p7 }
  0x52   :  { %476 = shalt.err (!%p473_p11)
}
  0x53   :  { %63 = dma.hbm_to_vmem [thread:$0]  %s632_s4, 16, %s61_s14, [#allocation9]  }
  0x54   :  { %499 = dma.done.wait [#allocation3], 128  }
  0x55   :  { %500 = vsyncadd [#allocation3], 4294967168 }
  0x56   :  { %501 = dma.done.wait [#allocation6], 160  }
  0x57   :  { %502 = vsyncadd [#allocation6], 4294967136 }
  0x58   :  { %503 = dma.done.wait [#allocation9], 48  }
  0x59   :  { %504 = vsyncadd [#allocation9], 4294967248  ;;  %v512_v0 = vmov 1   ;;  %v81_v1 = vld [vmem:[#allocation7] sm:$0xff]  ;;  %v513_v2 = vmov 0   ;;  %v96_v3 = vlaneseq  ;;  %vm86_vm2 = vcmask 64512  }
  0x5a   :  { %356 = vset.pattern.permute.xlu0 %v512_v0  ;;  %v82_v5 = vld [vmem:[#allocation8] sm:$0x3]  ;;  %v80_v7 = vld [vmem:[#allocation5] sm:$0x3]  ;;  %v79_v25 = vld [vmem:[#allocation2] sm:$0xff]  ;;  %s514_s4 = smov 112  }
  0x5b   :  { %190 = vperm.xlu0 %356, %v81_v1   ;;  %v97_v4 = vshrl.u32 %v96_v3, 7  ;;  %v83_v8 = vunpack.c.0.s8 %v82_v5  ;;  %v515_v37 = vmov 0.0   ;;  %vm516_vm4 = vmmov 0   ;;  %s517_s25 = smov 16   ;;  %v329_v49 = vld [vmem:[#allocation10] ss:$0 sm:$0xff] }
  0x5c   :  { %339 = vmatprep.subr.mxu1 %v515_v37  ;;  %341 = vmatprep.mubr.msk.f32.mxu1 %vm516_vm4, %v515_v37  ;;  %vm294_vm5 = vcmask 130048   ;;  %s518_s26 = smov [#allocation11]   ;;  %vm308_vm7 = vcmask 261120  }
  0x5d   :  { %v195_v6 = vsub.s32 1, %v97_v4  ;;  %v98_v10 = vsub.s32 0, %v97_v4  ;;  %v84_v11 = vcvt.s32.f32 %v83_v8  ;;  %334 = vmatprep.subr.mxu0 %v515_v37  ;;  %336 = vmatprep.mubr.msk.f32.mxu0 %vm516_vm4, %v515_v37  ;;  %s316_s27 = sshll.u32 %s518_s26, 4  ;;  %s317_s27 = int_to_ptr.vmem [resolvable:$true] %s316_s27 }
  0x5e   :  { %335 = vmatpush3.msra.mxu0 %v79_v25  ;;  %s477_s3 = scalar_lea.vmem %s317_s27, 128  ;;  %p482_p13 = scmp.lt.s32.totalorder %s317_s27, %s317_s27 }
  0x5f   :  { %357 = vset.pattern.permute.xlu0 %v513_v2  ;;  %v196_v9 = vrot.slane %v80_v7, %v195_v6  ;;  %v99_v14 = vrot.slane %v80_v7, %v98_v10  ;;  %vm85_vm0 = vcmp.gt.f32.partialorder %v84_v11, 0.0  ;;  %v87_v38 = vsel %vm86_vm2, %v84_v11, 0.0  ;;  %p478_p12 = scmp.ne.s32.totalorder %s317_s27, %s477_s3  ;;  %p483_p0 = scmp.lt.s32.totalorder %s477_s3, %s477_s3 }
  0x60   :  { %93 = vperm.xlu0 %357, %v81_v1  }
  0x61   :  { %p484_p1 = por %p483_p0, %p482_p13 }
  0x63   :  { %p485_p2 = pnand %p484_p1, %p478_p12 }
  0x64   :  { %358 = vset.pattern.permute.xlu0 %v512_v0 }
  0x65   :  { %214 = vrot.lane.b32.xlu0 %v79_v25, %s514_s4 }
  0x84   :  { %88 = vadd.xlane.f32.xlu0 %v87_v38 }
  0xda   :  { %v191_v12 = vpop.permute.xlu0 %190 }
  0xdb   :  { %v197_v13 = vadd.f32 %v196_v9, %v191_v12 }
  0xdd   :  { %v199_v15 = vmul.f32 0.2, %v197_v13  ;;  %vm198_vm1 = vcmp.gt.f32.partialorder %v197_v13, 0.0 }
  0xdf   :  { %v94_v16 = vpop.permute.xlu0 %93  ;;  %v200_v17 = vsel %vm198_vm1, %v197_v13, %v199_v15 }
  0xe0   :  { %v100_v18 = vadd.f32 %v99_v14, %v94_v16  ;;  %v201_v19 = vsel %vm85_vm0, %v200_v17, -1e+30 }
  0xe1   :  { %v202_v20 = vsel %vm86_vm2, %v201_v19, -inf }
  0xe2   :  { %v102_v21 = vmul.f32 0.2, %v100_v18  ;;  %203 = vmax.xlane.f32.xlu1 %v202_v20  ;;  %vm101_vm3 = vcmp.gt.f32.partialorder %v100_v18, 0.0 }
  0xe3   :  { %v215_v36 = vpop.permute.xlu0 %214 }
  0xe4   :  { %v103_v22 = vsel %vm101_vm3, %v100_v18, %v102_v21  ;;  %340 = vmatpush3.msra.mxu1 %v215_v36 }
  0xe5   :  { %v104_v23 = vsel %vm85_vm0, %v103_v22, -1e+30 }
  0xe6   :  { %v105_v24 = vsel %vm86_vm2, %v104_v23, -inf }
  0xe7   :  { %106 = vmax.xlane.f32.xlu1 %v105_v24 }
 0x111   :  { %v89_v51 = vpop.xlane.xlu0 %88 }
 0x112   :  { %vm90_vm6 = vcmp.gt.f32.partialorder %v89_v51, 0.0 }
 0x16f   :  { %v204_v26 = vpop.xlane.xlu1 %203 }
 0x170   :  { %v205_v27 = vsub.f32 %v201_v19, %v204_v26 }
 0x172   :  { %v206_v28 = vmul.f32 1.442695, %v205_v27 }
 0x174   :  { %359 = vpow2.f32 %v206_v28  ;;  %v107_v29 = vpop.xlane.xlu1 %106 }
 0x175   :  { %v108_v30 = vsub.f32 %v104_v23, %v107_v29 }
 0x177   :  { %v109_v31 = vmul.f32 1.442695, %v108_v30 }
 0x179   :  { %361 = vpow2.f32 %v109_v31 }
 0x17e   :  { %v360_v32 = vpop.eup %359 }
 0x17f   :  { %v208_v33 = vsel %vm86_vm2, %v360_v32, 0.0 }
 0x180   :  { %209 = vadd.xlane.f32.xlu1 %v208_v33 }
 0x183   :  { %v362_v34 = vpop.eup %361 }
 0x184   :  { %v111_v35 = vsel %vm86_vm2, %v362_v34, 0.0 }
 0x185   :  { %112 = vadd.xlane.f32.xlu1 %v111_v35 }
 0x20d   :  { %v210_v39 = vpop.xlane.xlu1 %209 }
 0x20e   :  { %363 = vrcp.f32 %v210_v39 }
 0x212   :  { %v113_v40 = vpop.xlane.xlu1 %112 }
 0x213   :  { %365 = vrcp.f32 %v113_v40 }
 0x218   :  { %v364_v41 = vpop.eup %363 }
 0x219   :  { %v212_v42 = vmul.f32 %v364_v41, %v360_v32 }
 0x21b   :  { %342 = vmatmul.mubr.msk.f32.vlgmr.msra.gmra.mrb[0].mxu1 %vm86_vm2, %v212_v42 }
 0x21d   :  { %v366_v43 = vpop.eup %365 }
 0x21e   :  { %v115_v44 = vmul.f32 %v366_v43, %v362_v34 }
 0x220   :  { %337 = vmatmul.mubr.msk.f32.vlgmr.msra.gmra.mrb[0].mxu0 %vm86_vm2, %v115_v44 }
 0x2ee   :  { %v286_v45 = vpop.f32.mrb[0].mxu1 }
 0x2ef   :  { %291 = vrot.lane.b32.xlu1 %v286_v45, %s517_s25  ;;  %v343_v46 = vpop.f32.mrb[1].mxu1 }
 0x2f3   :  { %v185_v47 = vpop.f32.mrb[0].mxu0 }
 0x2f4   :  { %v338_v48 = vpop.f32.mrb[1].mxu0 }
 0x361   :  { %v292_v50 = vpop.permute.xlu1 %291 }
 0x362   :  { %v295_v52 = vsel %vm294_vm5, %v185_v47, %v292_v50 }
 0x363   :  { %v303_v53 = vadd.f32 %v329_v49, %v295_v52 }
 0x365   :  { %v304_v54 = vmax.f32 %v303_v53, 0.0 }
 0x367   :  { %v307_v55 = vsel %vm90_vm6, %v304_v54, 0.0 }
 0x368   :  { %309 = vst.msk [vmem:[#allocation11] sm:$0xff] %vm308_vm7, %v307_v55 }
 0x369   :  { %488 = shalt.err (!%p485_p2)
}
 0x36a   :  { %s489_s29 = scalar_lea.hbm %s633_s5, 128 }
 0x36b   :  { %p490_p3 = scmp.ne.s32.totalorder %s633_s5, %s489_s29  ;;  %p493_p4 = scmp.lt.u32.totalorder %s489_s29, %s633_s5 }
 0x36d   :  { %p495_p5 = pnand %p493_p4, %p490_p3 }
 0x36f   :  { %498 = shalt.err (!%p495_p5)
}
 0x370   :  { %319 = dma.vmem_to_hbm [thread:$0]  %s317_s27, 128, %s633_s5, [#allocation4]  }
 0x371   :  { %505 = dma.done.wait [#allocation4], 128  }
 0x372   :  { %506 = vsyncadd [#allocation4], 4294967168 }
 0x373   :  { %323 = vsyncpa [#allocation3], 1 }
 0x374   :  { %324 = vsyncpa [#allocation6], 1 }
 0x375   :  { %325 = vsyncpa [#allocation9], 1 }
 0x376   :  { %326 = vsyncpa [#allocation4], 1 }

</bundles_post_ra>
